<compile_context>
chip_gen: v7x
topology: tpu7x:2x2x1
jax: 0.10.0
libtpu: 0.0.40
codegen_flags: <defaults>
</compile_context>

<pallas_src>
import functools

import jax
import jax.numpy as jnp
from jax.experimental import pallas as pl
from jax.experimental.pallas import tpu as pltpu

LN_EPS = 1e-5  # matches nn.LayerNorm default


def _round_up(a, b):
    return (a + b - 1) // b * b


def _pick_tile(size, max_tile, align):
    """Pick a tile (multiple of `align`, <= max_tile) minimizing total padding."""
    size_a = _round_up(size, align)
    max_t = min(_round_up(max_tile, align), size_a)
    best_t, best_pad = align, None
    for t in range(align, max_t + 1, align):
        pad_total = _round_up(size_a, t)
        if best_pad is None or pad_total < best_pad or (
                pad_total == best_pad and t > best_t):
            best_t, best_pad = t, pad_total
    return best_t


def _ff_kernel(x_ref, gamma_ref, beta_ref, w_ref, b_ref, o_ref, normed_ref, *,
               apply_relu, inv_d):
    # x_ref: (tm, D) row tile (resident across the j sweep); gamma/beta: (1, D);
    # w_ref: (D, tn); b_ref: (1, tn); normed_ref: (tm, D) VMEM scratch.

    # LayerNorm once per row tile: only at the first N-tile.
    @pl.when(pl.program_id(1) == 0)
    def _():
        x = x_ref[...].astype(jnp.float32)
        s1 = jnp.sum(x, axis=-1, keepdims=True)
        s2 = jnp.sum(x * x, axis=-1, keepdims=True)
        mean = s1 * inv_d
        var = jnp.maximum(s2 * inv_d - mean * mean, 0.0)  # biased, like torch
        inv = jax.lax.rsqrt(var + LN_EPS)                 # (tm, 1)
        # Fold gamma*inv into a single scale; shift absorbs beta and mean.
        scale = inv * gamma_ref[...].astype(jnp.float32)  # (tm, D)
        shift = beta_ref[...].astype(jnp.float32) - mean * scale
        normed_ref[...] = (x * scale + shift).astype(normed_ref.dtype)

    # MXU matmul: operands in the weight dtype, f32 accumulate.
    y = jnp.dot(normed_ref[...], w_ref[...], preferred_element_type=jnp.float32)
    y = y + b_ref[...].astype(jnp.float32)

    if apply_relu:
        y = jnp.maximum(y, 0.0)

    o_ref[...] = y.astype(o_ref.dtype)


def ff_layer(x, gamma, beta, w_t, b, *, activation="relu",
             tile_m=256, tile_n=256):
    """Fused LayerNorm -> Linear -> activation.

    x: (..., D); gamma/beta: (D,); w_t: (D, N) (nn.Linear weight transposed);
    b: (N,).  Returns (..., N) in x.dtype.
    """
    orig_shape = x.shape
    D = orig_shape[-1]
    M = 1
    for s in orig_shape[:-1]:
        M *= s
    N = w_t.shape[1]
    x2 = x.reshape(M, D)

    if activation == "relu":
        apply_relu = True
    elif activation == "linear":
        apply_relu = False
    else:
        raise NotImplementedError(activation)

    # ---- tile selection: 8-aligned rows, lane-dense (x128) output columns ----
    tm = _pick_tile(M, tile_m, 8)
    tn = _pick_tile(N, tile_n, 128)
    m_pad = _round_up(M, tm)
    n_pad = _round_up(N, tn)

    if m_pad != M:
        x2 = jnp.pad(x2, ((0, m_pad - M), (0, 0)))
    w_p = w_t if n_pad == N else jnp.pad(w_t, ((0, 0), (0, n_pad - N)))
    b_p = b if n_pad == N else jnp.pad(b, (0, n_pad - N))

    gamma2 = gamma.reshape(1, D)
    beta2 = beta.reshape(1, D)
    b2 = b_p.reshape(1, n_pad)

    grid = (m_pad // tm, n_pad // tn)

    # VMEM estimate: double-buffered x / W / bias / out tiles, the normed
    # scratch, and f32 intermediates.  Clamp with headroom under 64 MiB (v7x).
    est = (2 * tm * D * x2.dtype.itemsize
           + 2 * D * tn * w_p.dtype.itemsize
           + 2 * tn * w_p.dtype.itemsize
           + 2 * tm * tn * x.dtype.itemsize
           + tm * D * w_p.dtype.itemsize
           + 4 * (D + tn) * 4
           + (2 * tm * D + tm * tn) * 4)
    vmem_limit = int(min(48 * 1024 * 1024, max(16 * 1024 * 1024, 4 * est)))

    kernel = functools.partial(_ff_kernel, apply_relu=apply_relu,
                               inv_d=1.0 / float(D))

    out = pl.pallas_call(
        kernel,
        out_shape=jax.ShapeDtypeStruct((m_pad, n_pad), x.dtype),
        grid_spec=pltpu.PrefetchScalarGridSpec(
            num_scalar_prefetch=0,
            grid=grid,
            in_specs=[
                pl.BlockSpec((tm, D), lambda i, j: (i, 0)),   # x rows (resident across j)
                pl.BlockSpec((1, D), lambda i, j: (0, 0)),    # gamma
                pl.BlockSpec((1, D), lambda i, j: (0, 0)),    # beta
                pl.BlockSpec((D, tn), lambda i, j: (0, j)),   # W^T column tile
                pl.BlockSpec((1, tn), lambda i, j: (0, j)),   # bias tile
            ],
            out_specs=pl.BlockSpec((tm, tn), lambda i, j: (i, j)),
            scratch_shapes=[pltpu.VMEM((tm, D), w_p.dtype)],  # cached LN output
        ),
        compiler_params=pltpu.CompilerParams(
            # j must be serial ("arbitrary") so the LN scratch computed at
            # j == 0 is valid for the whole N-tile sweep; i shards across cores.
            dimension_semantics=("parallel", "arbitrary"),
            vmem_limit_bytes=vmem_limit),
    )(x2, gamma2, beta2, w_p, b2)

    out = out[:M, :N]
    return out.reshape(orig_shape[:-1] + (N,))


def _reference(x, gamma, beta, w_t, b, activation="relu"):
    x32 = x.astype(jnp.float32)
    mean = jnp.mean(x32, axis=-1, keepdims=True)
    var = jnp.mean((x32 - mean) ** 2, axis=-1, keepdims=True)
    normed = ((x32 - mean) * jax.lax.rsqrt(var + LN_EPS)
              * gamma.astype(jnp.float32) + beta.astype(jnp.float32))
    y = jnp.dot(normed.astype(w_t.dtype), w_t,
                preferred_element_type=jnp.float32) + b.astype(jnp.float32)
    if activation == "relu":
        y = jnp.maximum(y, 0.0)
    return y.astype(x.dtype)


if __name__ == "__main__":
    key = jax.random.PRNGKey(0)

    # ---- Case 1: small shapes implied by the module (batch, seq, hidden) ----
    batch, seq = 2, 8
    input_size, output_size = 32, 32
    k1, k2, k3, k4, k5, key = jax.random.split(key, 6)
    x = jax.random.normal(k1, (batch, seq, input_size), dtype=jnp.float32)
    w = jax.random.normal(k2, (output_size, input_size), dtype=jnp.float32) * 0.1
    b = jax.random.normal(k3, (output_size,), dtype=jnp.float32) * 0.1
    gamma = 1.0 + 0.01 * jax.random.normal(k4, (input_size,), dtype=jnp.float32)
    beta = 0.01 * jax.random.normal(k5, (input_size,), dtype=jnp.float32)
    w_t = w.T  # (D, N)

    for act in ("relu", "linear"):
        out = jax.block_until_ready(
            ff_layer(x, gamma, beta, w_t, b, activation=act))
        ref = _reference(x, gamma, beta, w_t, b, activation=act)
        assert out.shape == (batch, seq, output_size)
        assert jnp.allclose(out, ref, atol=1e-4, rtol=1e-4), f"{act}: mismatch"

    # ---- Case 2: bf16, MXU-friendly tiles, non-divisible M / N ----
    M2, D2, N2 = 300, 256, 384
    k1, k2, k3, k4, k5, key = jax.random.split(key, 6)
    x2 = jax.random.normal(k1, (M2, D2), dtype=jnp.bfloat16)
    w2 = (jax.random.normal(k2, (N2, D2), dtype=jnp.float32) * 0.05).astype(jnp.bfloat16)
    b2 = (jax.random.normal(k3, (N2,), dtype=jnp.float32) * 0.1).astype(jnp.bfloat16)
    g2 = (1.0 + 0.01 * jax.random.normal(k4, (D2,), dtype=jnp.float32)).astype(jnp.bfloat16)
    be2 = (0.01 * jax.random.normal(k5, (D2,), dtype=jnp.float32)).astype(jnp.bfloat16)
    w2_t = w2.T

    out2 = jax.block_until_ready(
        ff_layer(x2, g2, be2, w2_t, b2, activation="relu",
                 tile_m=256, tile_n=256))
    ref2 = _reference(x2, g2, be2, w2_t, b2, activation="relu")
    assert out2.shape == (M2, N2)
    assert jnp.allclose(out2.astype(jnp.float32), ref2.astype(jnp.float32),
                        atol=2e-2, rtol=2e-2), "bf16 case: mismatch"

    print("KERNEL_OK")
</pallas_src>

<mosaic_0001>
module attributes {stable_mosaic.version = 11 : i64} {
  func.func @_ff_kernel(%arg0: i32, %arg1: i32, %arg2: memref<16x32xf32, #tpu.memory_space<vmem>>, %arg3: memref<1x32xf32, #tpu.memory_space<vmem>>, %arg4: memref<1x32xf32, #tpu.memory_space<vmem>>, %arg5: memref<32x128xf32, #tpu.memory_space<vmem>>, %arg6: memref<1x128xf32, #tpu.memory_space<vmem>>, %arg7: memref<16x128xf32, #tpu.memory_space<vmem>>, %arg8: memref<16x32xf32, #tpu.memory_space<vmem>>) attributes {dimension_semantics = [#tpu.dimension_semantics<parallel>, #tpu.dimension_semantics<arbitrary>], iteration_bounds = array<i64: 1, 1>, scalar_prefetch = 0 : i64, scratch_operands = 1 : i64, tpu.core_type = #tpu.core_type<tc>, window_params = [{transform_indices = @transform_0, window_bounds = array<i64: 16, 32>}, {pipeline_mode = #tpu.pipeline_mode<synchronous>, transform_indices = @transform_1, window_bounds = array<i64: 1, 32>}, {pipeline_mode = #tpu.pipeline_mode<synchronous>, transform_indices = @transform_2, window_bounds = array<i64: 1, 32>}, {transform_indices = @transform_3, window_bounds = array<i64: 32, 128>}, {transform_indices = @transform_4, window_bounds = array<i64: 1, 128>}, {transform_indices = @transform_5, window_bounds = array<i64: 16, 128>}]} {
    %c0_i32 = arith.constant 0 : i32
    %0 = arith.cmpi eq, %arg1, %c0_i32 : i32
    %1 = arith.extui %0 : i1 to i32
    %c0_i32_0 = arith.constant 0 : i32
    %2 = arith.cmpi ne, %1, %c0_i32_0 : i32
    scf.if %2 {
      %c0_9 = arith.constant 0 : index
      %c0_10 = arith.constant 0 : index
      %12 = vector.load %arg2[%c0_9, %c0_10] : memref<16x32xf32, #tpu.memory_space<vmem>>, vector<16x32xf32>
      %cst_11 = arith.constant dense<0.000000e+00> : vector<16xf32>
      %13 = vector.multi_reduction <add>, %12, %cst_11 [1] : vector<16x32xf32> to vector<16xf32>
      %14 = vector.shape_cast %13 : vector<16xf32> to vector<16x1xf32>
      %15 = arith.mulf %12, %12 : vector<16x32xf32>
      %cst_12 = arith.constant dense<0.000000e+00> : vector<16xf32>
      %16 = vector.multi_reduction <add>, %15, %cst_12 [1] : vector<16x32xf32> to vector<16xf32>
      %17 = vector.shape_cast %16 : vector<16xf32> to vector<16x1xf32>
      %cst_13 = arith.constant 3.125000e-02 : f32
      %18 = vector.broadcast %cst_13 : f32 to vector<16x1xf32>
      %19 = arith.mulf %14, %18 : vector<16x1xf32>
      %cst_14 = arith.constant 3.125000e-02 : f32
      %20 = vector.broadcast %cst_14 : f32 to vector<16x1xf32>
      %21 = arith.mulf %17, %20 : vector<16x1xf32>
      %22 = arith.mulf %19, %19 : vector<16x1xf32>
      %23 = arith.subf %21, %22 : vector<16x1xf32>
      %cst_15 = arith.constant 0.000000e+00 : f32
      %24 = vector.broadcast %cst_15 : f32 to vector<16x1xf32>
      %25 = arith.maximumf %23, %24 : vector<16x1xf32>
      %cst_16 = arith.constant 9.99999974E-6 : f32
      %26 = vector.broadcast %cst_16 : f32 to vector<16x1xf32>
      %27 = arith.addf %25, %26 : vector<16x1xf32>
      %28 = math.rsqrt %27 : vector<16x1xf32>
      %c0_17 = arith.constant 0 : index
      %c0_18 = arith.constant 0 : index
      %29 = vector.load %arg3[%c0_17, %c0_18] : memref<1x32xf32, #tpu.memory_space<vmem>>, vector<1x32xf32>
      %30 = vector.broadcast %28 : vector<16x1xf32> to vector<16x32xf32>
      %31 = vector.broadcast %29 : vector<1x32xf32> to vector<16x32xf32>
      %32 = arith.mulf %30, %31 : vector<16x32xf32>
      %c0_19 = arith.constant 0 : index
      %c0_20 = arith.constant 0 : index
      %33 = vector.load %arg4[%c0_19, %c0_20] : memref<1x32xf32, #tpu.memory_space<vmem>>, vector<1x32xf32>
      %34 = vector.broadcast %19 : vector<16x1xf32> to vector<16x32xf32>
      %35 = arith.mulf %34, %32 : vector<16x32xf32>
      %36 = vector.broadcast %33 : vector<1x32xf32> to vector<16x32xf32>
      %37 = arith.subf %36, %35 : vector<16x32xf32>
      %38 = arith.mulf %12, %32 : vector<16x32xf32>
      %39 = arith.addf %38, %37 : vector<16x32xf32>
      %c0_21 = arith.constant 0 : index
      %c0_22 = arith.constant 0 : index
      %40 = vector.load %arg8[%c0_21, %c0_22] : memref<16x32xf32, #tpu.memory_space<vmem>>, vector<16x32xf32>
      tpu.vector_store %arg8[%c0_21, %c0_22], %39 {strides = array<i32>} : memref<16x32xf32, #tpu.memory_space<vmem>>, vector<16x32xf32>,
    } else {
    }
    %c0 = arith.constant 0 : index
    %c0_1 = arith.constant 0 : index
    %3 = vector.load %arg8[%c0, %c0_1] : memref<16x32xf32, #tpu.memory_space<vmem>>, vector<16x32xf32>
    %c0_2 = arith.constant 0 : index
    %c0_3 = arith.constant 0 : index
    %4 = vector.load %arg5[%c0_2, %c0_3] : memref<32x128xf32, #tpu.memory_space<vmem>>, vector<32x128xf32>
    %cst = arith.constant dense<0.000000e+00> : vector<16x128xf32>
    %5 = tpu.matmul %3, %4, %cst {dimension_numbers = #tpu.dot_dimension_numbers<[1], [0], [0], [1], [0, 0, 1, 1], [], []>} : vector<16x32xf32>, vector<32x128xf32>, vector<16x128xf32> -> vector<16x128xf32>
    %c0_4 = arith.constant 0 : index
    %c0_5 = arith.constant 0 : index
    %6 = vector.load %arg6[%c0_4, %c0_5] : memref<1x128xf32, #tpu.memory_space<vmem>>, vector<1x128xf32>
    %7 = vector.broadcast %6 : vector<1x128xf32> to vector<16x128xf32>
    %8 = arith.addf %5, %7 : vector<16x128xf32>
    %cst_6 = arith.constant 0.000000e+00 : f32
    %9 = vector.broadcast %cst_6 : f32 to vector<16x128xf32>
    %10 = arith.maximumf %8, %9 : vector<16x128xf32>
    %c0_7 = arith.constant 0 : index
    %c0_8 = arith.constant 0 : index
    %11 = vector.load %arg7[%c0_7, %c0_8] : memref<16x128xf32, #tpu.memory_space<vmem>>, vector<16x128xf32>
    tpu.vector_store %arg7[%c0_7, %c0_8], %10 {strides = array<i32>} : memref<16x128xf32, #tpu.memory_space<vmem>>, vector<16x128xf32>,
    return
  }
  func.func @transform_0(%arg0: i32, %arg1: i32) -> (i32, i32) {
    %c0_i32 = arith.constant 0 : i32
    %c0_i32_0 = arith.constant 0 : i32
    return %arg0, %c0_i32 : i32, i32
  }
  func.func @transform_1(%arg0: i32, %arg1: i32) -> (i32, i32) {
    %c0_i32 = arith.constant 0 : i32
    %c0_i32_0 = arith.constant 0 : i32
    %c0_i32_1 = arith.constant 0 : i32
    return %c0_i32, %c0_i32_0 : i32, i32
  }
  func.func @transform_2(%arg0: i32, %arg1: i32) -> (i32, i32) {
    %c0_i32 = arith.constant 0 : i32
    %c0_i32_0 = arith.constant 0 : i32
    %c0_i32_1 = arith.constant 0 : i32
    return %c0_i32, %c0_i32_0 : i32, i32
  }
  func.func @transform_3(%arg0: i32, %arg1: i32) -> (i32, i32) {
    %c0_i32 = arith.constant 0 : i32
    %c0_i32_0 = arith.constant 0 : i32
    return %c0_i32, %arg1 : i32, i32
  }
  func.func @transform_4(%arg0: i32, %arg1: i32) -> (i32, i32) {
    %c0_i32 = arith.constant 0 : i32
    %c0_i32_0 = arith.constant 0 : i32
    return %c0_i32, %arg1 : i32, i32
  }
  func.func @transform_5(%arg0: i32, %arg1: i32) -> (i32, i32) {
    %c0_i32 = arith.constant 0 : i32
    return %arg0, %arg1 : i32, i32
  }
}

</mosaic_0001>

<bundles_post_ra>
// kernel: tpu_custom_call.1
= control target key start
LH: loop header
LB: loop body
LE: loop exit
PB: predicated region body
PF: predicated region fallthrough
CT: control target
= control target key end

     0   :  { %10 = vsyncpa [#allocation4], 0  ;;  %s435_s0 = inlined_call_operand.hbm [shape: f32[16,32], index: 0, kind: input, shape index: {}]   ;;  %s436_s1 = inlined_call_operand.vmem [shape: f32[1,32], index: 1, kind: input, shape index: {}]   ;;  %s437_s2 = inlined_call_operand.vmem [shape: f32[1,32], index: 2, kind: input, shape index: {}]   ;;  %s438_s3 = inlined_call_operand.hbm [shape: f32[32,128], index: 3, kind: input, shape index: {}]   ;;  %s439_s4 = inlined_call_operand.vmem [shape: f32[1,128], index: 4, kind: input, shape index: {}]   ;;  %s440_s5 = inlined_call_operand.hbm [shape: f32[16,128], index: 5, kind: output, shape index: {}]  }
   0x1   :  { %11 = vsyncpa [#allocation7], 0 }
   0x2   :  { %12 = vsyncpa [#allocation5], 0  ;;  %s338_s18 = smov [#allocation3]   ;;  %s266_s22 = scalar_lea.hbm %s435_s0, 256 }
   0x3   :  { %s18_s19 = sshll.u32 %s338_s18, 4  ;;  %p267_p0 = scmp.ne.s32.totalorder %s435_s0, %s266_s22  ;;  %s19_s19 = int_to_ptr.vmem [resolvable:$true] %s18_s19 }
   0x4   :  { %p270_p1 = scmp.lt.u32.totalorder %s266_s22, %s435_s0 }
   0x6   :  { %p272_p2 = pnand %p270_p1, %p267_p0 }
   0x8   :  { %275 = shalt.err (!%p272_p2)
}
   0x9   :  { %s276_s27 = scalar_lea.vmem %s19_s19, 256  ;;  %p281_p4 = scmp.lt.s32.totalorder %s19_s19, %s19_s19 }
   0xa   :  { %p277_p3 = scmp.ne.s32.totalorder %s19_s19, %s276_s27  ;;  %p282_p5 = scmp.lt.s32.totalorder %s276_s27, %s276_s27 }
   0xc   :  { %p283_p6 = por %p282_p5, %p281_p4 }
   0xe   :  { %p284_p7 = pnand %p283_p6, %p277_p3 }
  0x10   :  { %287 = shalt.err (!%p284_p7)
}
  0x11   :  { %s339_s28 = smov 128   ;;  %s340_s29 = smov 8  }
  0x12   :  { %24 = dma.hbm_to_vmem [thread:$0]  %s435_s0, 256, %s19_s19, [#allocation4], %s339_s28, %s339_s28, %s340_s29  }
  0x13   :  { %s341_s7 = smov [#allocation6]   ;;  %s288_s11 = scalar_lea.hbm %s438_s3, 512 }
  0x14   :  { %s34_s8 = sshll.u32 %s341_s7, 4  ;;  %p289_p8 = scmp.ne.s32.totalorder %s438_s3, %s288_s11  ;;  %s35_s8 = int_to_ptr.vmem [resolvable:$true] %s34_s8 }
  0x15   :  { %p292_p9 = scmp.lt.u32.totalorder %s288_s11, %s438_s3 }
  0x17   :  { %p294_p10 = pnand %p292_p9, %p289_p8 }
  0x19   :  { %297 = shalt.err (!%p294_p10)
}
  0x1a   :  { %s298_s16 = scalar_lea.vmem %s35_s8, 512  ;;  %p303_p12 = scmp.lt.s32.totalorder %s35_s8, %s35_s8 }
  0x1b   :  { %p299_p11 = scmp.ne.s32.totalorder %s35_s8, %s298_s16  ;;  %p304_p13 = scmp.lt.s32.totalorder %s298_s16, %s298_s16 }
  0x1d   :  { %p305_p0 = por %p304_p13, %p303_p12 }
  0x1f   :  { %p306_p1 = pnand %p305_p0, %p299_p11 }
  0x21   :  { %309 = shalt.err (!%p306_p1)
}
  0x22   :  { %40 = dma.hbm_to_vmem [thread:$0]  %s438_s3, 512, %s35_s8, [#allocation7], %s339_s28, %s339_s28, %s340_s29  }
  0x23   :  { %332 = dma.done.wait [#allocation4], 256  }
  0x24   :  { %333 = vsyncadd [#allocation4], 4294967040 }
  0x25   :  { %334 = dma.done.wait [#allocation7], 512  }
  0x26   :  { %335 = vsyncadd [#allocation7], 4294966784  ;;  %vm55_vm0 = vcmask 261120   ;;  %v53_v0 = vld [vmem:[#allocation3] sm:$0xff]  ;;  %v54_v1 = vld [vmem:[#allocation3 + $0x8] sm:$0xff]  ;;  %s342_s21 = smov [#allocation8]  }
  0x27   :  { %v56_v2 = vsel %vm55_vm0, %v53_v0, 0.0  ;;  %v62_v3 = vmul.f32 %v53_v0, %v53_v0  ;;  %v63_v4 = vmul.f32 %v54_v1, %v54_v1  ;;  %v59_v6 = vsel %vm55_vm0, %v54_v1, 0.0  ;;  %v112_v8 = vld [vmem:[#allocation6] sm:$0xff]  ;;  %v113_v9 = vld [vmem:[#allocation6 + $0x8] sm:$0xff]  ;;  %v114_v11 = vld [vmem:[#allocation6 + $0x10] sm:$0xff]  ;;  %s214_s22 = sshll.u32 %s342_s21, 4  ;;  %s215_s22 = int_to_ptr.vmem [resolvable:$true] %s214_s22 }
  0x28   :  { %57 = vadd.xlane.f32.xlu0 %v56_v2  ;;  %v249_v10 = vpack.c.bf16 %v113_v9, %v112_v8  ;;  %v115_v12 = vld [vmem:[#allocation6 + $0x18] sm:$0xff]  ;;  %v227_v30 = vld [vmem:[%s436_s1] ss:$0 sm:$0xff]  ;;  %s310_s23 = scalar_lea.vmem %s215_s22, 256  ;;  %p315_p3 = scmp.lt.s32.totalorder %s215_s22, %s215_s22 }
  0x29   :  { %v64_v5 = vsel %vm55_vm0, %v62_v3, 0.0  ;;  %v67_v7 = vsel %vm55_vm0, %v63_v4, 0.0  ;;  %v253_v13 = vpack.c.bf16 %v115_v12, %v114_v11  ;;  %v228_v33 = vld [vmem:[%s437_s2] ss:$0 sm:$0xff]  ;;  %p311_p2 = scmp.ne.s32.totalorder %s215_s22, %s310_s23  ;;  %p316_p4 = scmp.lt.s32.totalorder %s310_s23, %s310_s23 }
  0x2a   :  { %65 = vadd.xlane.f32.xlu1 %v64_v5  ;;  %250 = vmatprep.subr.bf16.mxu0 %v249_v10  ;;  %v229_v46 = vld [vmem:[%s439_s4] ss:$0 sm:$0xff] }
  0x2b   :  { %252 = vmatpush3.bf16.msra.mxu0 %v249_v10  ;;  %p317_p5 = por %p316_p4, %p315_p3 }
  0x2c   :  { %60 = vadd.xlane.f32.xlu0 %v59_v6  ;;  %254 = vmatprep.subr.bf16.mxu0 %v253_v13 }
  0x2d   :  { %p318_p6 = pnand %p317_p5, %p311_p2 }
  0x2e   :  { %68 = vadd.xlane.f32.xlu1 %v67_v7 }
  0x2f   :  { %256 = vmatpush3.bf16.msra.mxu0 %v253_v13 }
  0xb5   :  { %v58_v14 = vpop.xlane.xlu0 %57 }
  0xb6   :  { %v70_v15 = vmul.f32 0.03125, %v58_v14 }
  0xb7   :  { %v66_v16 = vpop.xlane.xlu1 %65 }
  0xb8   :  { %v74_v17 = vmul.f32 %v70_v15, %v70_v15  ;;  %v72_v18 = vmul.f32 0.03125, %v66_v16 }
  0xb9   :  { %v61_v19 = vpop.xlane.xlu0 %60 }
  0xba   :  { %v76_v20 = vsub.f32 %v72_v18, %v74_v17  ;;  %v71_v21 = vmul.f32 0.03125, %v61_v19 }
  0xbb   :  { %v69_v22 = vpop.xlane.xlu1 %68 }
  0xbc   :  { %v78_v23 = vmax.f32 %v76_v20, 0.0  ;;  %v75_v24 = vmul.f32 %v71_v21, %v71_v21  ;;  %v73_v25 = vmul.f32 0.03125, %v69_v22 }
  0xbe   :  { %v80_v26 = vadd.f32 1e-05, %v78_v23  ;;  %v77_v27 = vsub.f32 %v73_v25, %v75_v24 }
  0xc0   :  { %262 = vrsqrt.f32 %v80_v26  ;;  %v79_v28 = vmax.f32 %v77_v27, 0.0 }
  0xc2   :  { %v81_v29 = vadd.f32 1e-05, %v79_v28 }
  0xc4   :  { %264 = vrsqrt.f32 %v81_v29 }
  0xca   :  { %v263_v31 = vpop.eup %262 }
  0xcb   :  { %v91_v32 = vmul.f32 %v263_v31, %v227_v30 }
  0xcd   :  { %v94_v34 = vmul.f32 %v91_v32, %v70_v15  ;;  %v104_v37 = vmul.f32 %v91_v32, %v53_v0 }
  0xce   :  { %v265_v35 = vpop.eup %264 }
  0xcf   :  { %v102_v36 = vsub.f32 %v228_v33, %v94_v34  ;;  %v92_v38 = vmul.f32 %v265_v35, %v227_v30 }
  0xd1   :  { %v106_v39 = vadd.f32 %v104_v37, %v102_v36  ;;  %v95_v40 = vmul.f32 %v92_v38, %v71_v21  ;;  %v105_v42 = vmul.f32 %v92_v38, %v54_v1 }
  0xd3   :  { %108 = vst.msk [vmem:[#allocation2] sm:$0xff] %vm55_vm0, %v106_v39  ;;  %v103_v41 = vsub.f32 %v228_v33, %v95_v40 }
  0xd5   :  { %v107_v43 = vadd.f32 %v105_v42, %v103_v41 }
  0xd7   :  { %109 = vst.msk [vmem:[#allocation2 + $0x8] sm:$0xff] %vm55_vm0, %v107_v43 }
  0xda   :  { %v110_v44 = vld [vmem:[#allocation2] sm:$0xff] }
  0xdb   :  { %246 = vmatprep.mubr.msk.f32.mxu0 %vm55_vm0, %v110_v44 }
  0xde   :  { %v111_v45 = vld [vmem:[#allocation2 + $0x8] sm:$0xff] }
  0xdf   :  { %247 = vmatmul.mubr.msk.f32.vlgmr.msra.gmra.mrb[0].mxu0 %vm55_vm0, %v111_v45 }
 0x1b2   :  { %v248_v47 = vpop.f32.mrb[0].mxu0 }
 0x1b3   :  { %v202_v48 = vadd.f32 %v248_v47, %v229_v46  ;;  %v196_v49 = vpop.f32.mrb[1].mxu0 }
 0x1b4   :  { %v197_v50 = vadd.f32 %v229_v46, %v196_v49 }
 0x1b5   :  { %v206_v51 = vmax.f32 %v202_v48, 0.0 }
 0x1b6   :  { %v205_v52 = vmax.f32 %v197_v50, 0.0 }
 0x1b7   :  { %208 = vst [vmem:[#allocation8 + $0x8] sm:$0xff] %v206_v51 }
 0x1b8   :  { %207 = vst [vmem:[#allocation8] sm:$0xff] %v205_v52 }
 0x1b9   :  { %321 = shalt.err (!%p318_p6)
}
 0x1ba   :  { %s322_s25 = scalar_lea.hbm %s440_s5, 256 }
 0x1bb   :  { %p323_p7 = scmp.ne.s32.totalorder %s440_s5, %s322_s25  ;;  %p326_p8 = scmp.lt.u32.totalorder %s322_s25, %s440_s5 }
 0x1bd   :  { %p328_p9 = pnand %p326_p8, %p323_p7 }
 0x1bf   :  { %331 = shalt.err (!%p328_p9)
}
 0x1c0   :  { %220 = dma.vmem_to_hbm [thread:$0]  %s215_s22, 256, %s440_s5, [#allocation5], %s339_s28, %s339_s28, %s340_s29  }
 0x1c1   :  { %336 = dma.done.wait [#allocation5], 256  }
 0x1c2   :  { %337 = vsyncadd [#allocation5], 4294967040 }
 0x1c3   :  { %224 = vsyncpa [#allocation4], 1 }
 0x1c4   :  { %225 = vsyncpa [#allocation7], 1 }
 0x1c5   :  { %226 = vsyncpa [#allocation5], 1 }

</bundles_post_ra>
